<compile_context>
chip_gen: v6e
topology: v6e:2x2x1
jax: 0.10.0
libtpu: 0.0.40
codegen_flags: <defaults>
</compile_context>

<pallas_src>
import math

import jax
import jax.numpy as jnp
from jax.experimental import pallas as pl
from jax.experimental.pallas import tpu as pltpu

_LANE = 128
_SUBLANE = 8
_WIDE_COLS = 1024                       # preferred lane-dense width
_TARGET_BLOCK_BYTES = 4 * 1024 * 1024   # ~4 MiB/block: amortizes ~0.35us/step
                                        # overhead; 2x(in+out) double buffers
                                        # stay far under 32 MiB scoped VMEM.


def concat_pooling(x: jax.Array) -> jax.Array:
    """Hot path for ConcatPooling.forward: identity, no kernel, no HBM traffic."""
    return x


def _copy_kernel(x_ref, o_ref):
    # Full-tile load/store of the current lane-dense block.
    o_ref[...] = x_ref[...]


def concat_pooling_pallas(x: jax.Array) -> jax.Array:
    """Identity pass-through via a Pallas copy kernel (if a kernel is required).

    Input:  (batch_size, seq_length, embed_dim)
    Output: (batch_size, seq_length, embed_dim), same dtype / values.
    """
    orig_shape = x.shape
    total = math.prod(orig_shape) if orig_shape else 1
    itemsize = x.dtype.itemsize

    # Lane-dense 2-D view: cols a (large) multiple of 128 when possible.
    if total % _WIDE_COLS == 0:
        cols = _WIDE_COLS
    elif total % _LANE == 0:
        cols = _LANE
    else:
        # Ragged tiny case: single full-extent block (no (8,128) constraint
        # when the block equals the full array dims).
        cols = total
    rows = total // cols
    x2d = x.reshape(rows, cols)

    # Block rows: aim for ~_TARGET_BLOCK_BYTES per block, multiple of 8,
    # or cover the full rows extent when the array is small.
    rows_for_target = max(1, _TARGET_BLOCK_BYTES // (cols * itemsize))
    if rows <= rows_for_target or rows < _SUBLANE:
        block_rows = rows
    else:
        block_rows = max(_SUBLANE, (rows_for_target // _SUBLANE) * _SUBLANE)

    grid = (pl.cdiv(rows, block_rows),)

    y2d = pl.pallas_call(
        _copy_kernel,
        out_shape=jax.ShapeDtypeStruct((rows, cols), x.dtype),
        grid=grid,
        in_specs=[pl.BlockSpec((block_rows, cols), lambda i: (i, 0))],
        out_specs=pl.BlockSpec((block_rows, cols), lambda i: (i, 0)),
        # Identity copy: let XLA alias the output buffer onto the input and
        # skip the HBM round trip whenever the input is donatable.
        input_output_aliases={0: 0},
        compiler_params=pltpu.CompilerParams(
            dimension_semantics=("parallel",),   # shards across v7x's 2 TCs
            vmem_limit_bytes=32 * 1024 * 1024,   # explicit, v7x-safe
        ),
    )(x2d)
    return y2d.reshape(orig_shape)


if __name__ == "__main__":
    key = jax.random.PRNGKey(0)
    batch, seq, embed = 2, 8, 32
    x = jax.random.normal(key, (batch, seq, embed), dtype=jnp.float32)

    # Recommended hot path: identity, zero cost.
    y_fast = concat_pooling(x)

    # Pallas kernel path (run once, block on result).
    y_kernel = concat_pooling_pallas(x)
    jax.block_until_ready(y_kernel)

    assert y_kernel.shape == x.shape, (y_kernel.shape, x.shape)
    assert y_kernel.dtype == x.dtype, (y_kernel.dtype, x.dtype)
    assert bool(jnp.array_equal(y_kernel, x)), "pallas identity output mismatch"
    assert bool(jnp.array_equal(y_fast, x)), "identity hot path mismatch"

    print("KERNEL_OK")
</pallas_src>

<mosaic_0001>
module attributes {stable_mosaic.version = 11 : i64} {
  func.func @_copy_kernel(%arg0: i32, %arg1: memref<4x128xf32, #tpu.memory_space<vmem>>, %arg2: memref<4x128xf32, #tpu.memory_space<vmem>>) attributes {dimension_semantics = [#tpu.dimension_semantics<parallel>], iteration_bounds = array<i64: 1>, scalar_prefetch = 0 : i64, scratch_operands = 0 : i64, tpu.core_type = #tpu.core_type<tc>, window_params = [{transform_indices = @transform_0, window_bounds = array<i64: 4, 128>}, {transform_indices = @transform_1, window_bounds = array<i64: 4, 128>}]} {
    %c0 = arith.constant 0 : index
    %c0_0 = arith.constant 0 : index
    %0 = vector.load %arg1[%c0, %c0_0] : memref<4x128xf32, #tpu.memory_space<vmem>>, vector<4x128xf32>
    %c0_1 = arith.constant 0 : index
    %c0_2 = arith.constant 0 : index
    %1 = vector.load %arg2[%c0_1, %c0_2] : memref<4x128xf32, #tpu.memory_space<vmem>>, vector<4x128xf32>
    tpu.vector_store %arg2[%c0_1, %c0_2], %0 {strides = array<i32>} : memref<4x128xf32, #tpu.memory_space<vmem>>, vector<4x128xf32>,
    return
  }
  func.func @transform_0(%arg0: i32) -> (i32, i32) {
    %c0_i32 = arith.constant 0 : i32
    %c0_i32_0 = arith.constant 0 : i32
    return %arg0, %c0_i32 : i32, i32
  }
  func.func @transform_1(%arg0: i32) -> (i32, i32) {
    %c0_i32 = arith.constant 0 : i32
    %c0_i32_0 = arith.constant 0 : i32
    return %arg0, %c0_i32 : i32, i32
  }
}

</mosaic_0001>

<bundles_post_ra>
// kernel: tpu_custom_call.1
= control target key start
LH: loop header
LB: loop body
LE: loop exit
PB: predicated region body
PF: predicated region fallthrough
CT: control target
= control target key end

     0   :  { %6 = vsyncpa [#allocation3], 0  ;;  %s102_s0 = inlined_call_operand.hbm [shape: f32[4,128], index: 0, kind: input, shape index: {}, may-alias: {0,1}]   ;;  %s103_s1 = inlined_call_operand.hbm [shape: f32[4,128], index: 1, kind: output, shape index: {}, may-alias: {0,1}]  }
   0x1   :  { %7 = vsyncpa [#allocation4], 0  ;;  %s84_s6 = smov [#allocation2]  }
   0x2   :  { %s14_s7 = sshll.u32 %s84_s6, 4  ;;  %s15_s7 = int_to_ptr.vmem [resolvable:$true] %s14_s7 }
   0x3   :  { %s48_s8 = scalar_lea.vmem %s15_s7, 64  ;;  %p53_p1 = scmp.lt.s32.totalorder %s15_s7, %s15_s7 }
   0x4   :  { %p49_p0 = scmp.ne.s32.totalorder %s15_s7, %s48_s8  ;;  %p54_p2 = scmp.lt.s32.totalorder %s48_s8, %s48_s8 }
   0x6   :  { %p55_p3 = por %p54_p2, %p53_p1 }
   0x8   :  { %p56_p4 = pnand %p55_p3, %p49_p0 }
   0xa   :  { %59 = shalt.err (!%p56_p4)
}
   0xb   :  { %17 = dma.hbm_to_vmem [thread:$0]  %s102_s0, 64, %s15_s7, [#allocation3]  }
   0xc   :  { %80 = dma.done.wait [#allocation3], 64  }
   0xd   :  { %81 = vsyncadd [#allocation3], 4294967232  ;;  %s85_s11 = smov [#allocation5]   ;;  %v21_v0 = vld [vmem:[#allocation2] sm:$0xf] }
   0xe   :  { %s29_s12 = sshll.u32 %s85_s11, 4  ;;  %22 = vst [vmem:[#allocation5] sm:$0xf] %v21_v0  ;;  %s30_s12 = int_to_ptr.vmem [resolvable:$true] %s29_s12 }
   0xf   :  { %s60_s13 = scalar_lea.vmem %s30_s12, 64  ;;  %p65_p6 = scmp.lt.s32.totalorder %s30_s12, %s30_s12 }
  0x10   :  { %p61_p5 = scmp.ne.s32.totalorder %s30_s12, %s60_s13  ;;  %p66_p7 = scmp.lt.s32.totalorder %s60_s13, %s60_s13 }
  0x12   :  { %p67_p8 = por %p66_p7, %p65_p6 }
  0x14   :  { %p68_p9 = pnand %p67_p8, %p61_p5 }
  0x16   :  { %71 = shalt.err (!%p68_p9)
}
  0x17   :  { %32 = dma.vmem_to_hbm [thread:$0]  %s30_s12, 64, %s103_s1, [#allocation4]  }
  0x18   :  { %82 = dma.done.wait [#allocation4], 64  }
  0x19   :  { %83 = vsyncadd [#allocation4], 4294967232 }
  0x1a   :  { %36 = vsyncpa [#allocation3], 1 }
  0x1b   :  { %37 = vsyncpa [#allocation4], 1 }

</bundles_post_ra>
